<compile_context>
chip_gen: v7x
topology: tpu7x:2x2x1
jax: 0.10.0
libtpu: 0.0.40
codegen_flags: <defaults>
</compile_context>

<pallas_src>
import functools
import math

import jax
import jax.numpy as jnp
from jax.experimental import pallas as pl
from jax.experimental.pallas import tpu as pltpu

NUM_REL = 6  # same_sample, same_class, diff_class, stoquery, querytos, query


# ---------------------------------------------------------------------------
# Parameter initialization (deterministic, mirrors nn.Module.__init__)
# ---------------------------------------------------------------------------
def init_params(key, hidden_size):
    # torch.nn.init.xavier_uniform_(key_relative_embedding, gain=calculate_gain('tanh'))
    # tensor shape (6, hidden_size): fan_in = hidden_size, fan_out = 6
    gain = 5.0 / 3.0  # calculate_gain('tanh')
    fan_in, fan_out = hidden_size, NUM_REL
    bound = gain * math.sqrt(6.0 / (fan_in + fan_out))
    key_relative_embedding = jax.random.uniform(
        key, (NUM_REL, hidden_size), minval=-bound, maxval=bound, dtype=jnp.float32
    )
    attn_weight = jnp.zeros((NUM_REL, 1), dtype=jnp.float32)  # unused in forward
    return key_relative_embedding, attn_weight


# ---------------------------------------------------------------------------
# Relative-position index map (L, L) int32 — replicates get_key_matrix() logic
# without materializing the (L, L, H) tensor.
# ---------------------------------------------------------------------------
def build_relative_index_matrix(N, K, query=True):
    L = N * K + 1
    rows = jnp.arange(L)[:, None]
    cols = jnp.arange(L)[None, :]

    idx = jnp.full((L, L), 2, dtype=jnp.int32)                    # default: diff_class
    idx = jnp.where((rows < N * K) & (cols == N * K), 3, idx)     # support row -> query col
    cls = rows // K
    same_cls = (rows < N * K) & (cols >= cls * K) & (cols < (cls + 1) * K)
    idx = jnp.where(same_cls, 1, idx)                             # same class block
    idx = jnp.where((rows < N * K) & (cols == rows), 0, idx)      # diagonal: same sample
    idx = jnp.where((rows == N * K) & (cols < N * K), 4, idx)     # query row -> support cols
    idx = jnp.where((rows == N * K) & (cols == N * K), 5, idx)    # query row, query col
    if not query:
        idx = idx[:-1, :-1]
    return idx


# ---------------------------------------------------------------------------
# Pallas kernel: batch-block of relative attention
# ---------------------------------------------------------------------------
def _rel_attn_kernel(q_ref, k_ref, v_ref, emb_ref, idx_ref, out_ref, attn_ref,
                     *, inv_temp):
    q = q_ref[...]          # (Bb, L, H)  input dtype (f32 or bf16 -> MXU)
    k = k_ref[...]          # (Bb, L, H)
    v = v_ref[...]          # (Bb, L, H)
    emb = emb_ref[...]      # (NUM_REL, H)
    idx = idx_ref[...]      # (L, L) int32

    bb = q.shape[0]

    # ---- content term: q @ k^T on the MXU, f32 accumulation ----
    scores = jnp.einsum("bih,bjh->bij", q, k, preferred_element_type=jnp.float32)

    # ---- relative term, factored through the 6-row embedding ----
    # proj[b, i, n] = <q[b, i, :], emb[n, :]>  (tiny batched MXU matmul)
    emb_b = jnp.broadcast_to(emb, (bb,) + emb.shape)          # (Bb, NUM_REL, H)
    proj = jnp.einsum("bih,bnh->bin", q, emb_b, preferred_element_type=jnp.float32)

    # rel[b, i, j] = proj[b, i, idx[i, j]]  via 6 VPU selects
    rel = jnp.zeros_like(scores)
    for n in range(NUM_REL):
        rel = rel + jnp.where(idx[None, :, :] == n, proj[:, :, n:n + 1], 0.0)

    # ---- scaled, numerically-stable softmax over the key axis ----
    s = (scores + rel) * inv_temp
    s = s - jnp.max(s, axis=-1, keepdims=True)
    e = jnp.exp(s)
    # approx reciprocal runs on the otherwise-idle EUP slot (effectively free).
    p = e * pl.reciprocal(jnp.sum(e, axis=-1, keepdims=True), approx=True)

    attn_ref[...] = p.astype(attn_ref.dtype)                  # f32 probabilities

    # ---- attn @ v (MXU), f32 accumulation ----
    out = jnp.einsum("bij,bjh->bih", p.astype(v.dtype), v,
                     preferred_element_type=jnp.float32)
    out_ref[...] = out.astype(out_ref.dtype)


def _pick_batch_block(B, L, H, itemsize, vmem_budget_bytes=8 << 20):
    # Rough per-batch VMEM footprint of one grid step: q/k/v/out blocks + attn
    # block (x2 for double buffering) plus f32 (L, L) intermediates and proj.
    per_b = (2 * (4 * L * H * itemsize + L * L * 4)
             + 4 * L * L * 4
             + L * NUM_REL * 4)
    bb = max(1, min(B, vmem_budget_bytes // max(per_b, 1)))
    while B % bb:            # largest divisor of B -> exact grid, no ragged tail
        bb -= 1
    return bb


def relative_attention(q, k, v, key_relative_embedding, rel_idx, temperature,
                       *, batch_block=None):
    """Returns (output (B, L, H) in q.dtype, attn (B, L, L) float32)."""
    B, L, H = q.shape
    assert k.shape == (B, L, H) and v.shape == (B, L, H)
    assert key_relative_embedding.shape == (NUM_REL, H)
    assert rel_idx.shape == (L, L)

    bb = batch_block if batch_block is not None else _pick_batch_block(
        B, L, H, q.dtype.itemsize)
    assert B % bb == 0

    emb = key_relative_embedding.astype(q.dtype)   # bf16 inputs -> bf16 MXU operand
    idx = rel_idx.astype(jnp.int32)

    kernel = functools.partial(_rel_attn_kernel, inv_temp=1.0 / float(temperature))

    out, attn = pl.pallas_call(
        kernel,
        out_shape=(
            jax.ShapeDtypeStruct((B, L, H), q.dtype),
            jax.ShapeDtypeStruct((B, L, L), jnp.float32),
        ),
        grid=(B // bb,),
        in_specs=[
            pl.BlockSpec((bb, L, H), lambda b: (b, 0, 0)),     # q
            pl.BlockSpec((bb, L, H), lambda b: (b, 0, 0)),     # k
            pl.BlockSpec((bb, L, H), lambda b: (b, 0, 0)),     # v
            pl.BlockSpec((NUM_REL, H), lambda b: (0, 0)),      # embedding (shared)
            pl.BlockSpec((L, L), lambda b: (0, 0)),            # relative index map (shared)
        ],
        out_specs=(
            pl.BlockSpec((bb, L, H), lambda b: (b, 0, 0)),     # output
            pl.BlockSpec((bb, L, L), lambda b: (b, 0, 0)),     # attn (f32)
        ),
        compiler_params=pltpu.CompilerParams(
            dimension_semantics=("parallel",),   # batch-block axis -> megacore / 2 TCs
        ),
    )(q, k, v, emb, idx)
    return out, attn


# ---------------------------------------------------------------------------
# Pure-JAX reference for validation (materializes key_matrix directly)
# ---------------------------------------------------------------------------
def reference_forward(q, k, v, key_matrix, temperature):
    qf = q.astype(jnp.float32)
    kf = k.astype(jnp.float32)
    vf = v.astype(jnp.float32)
    attn = jnp.einsum("bih,bjh->bij", qf, kf)
    rel = jnp.einsum("bih,ijh->bij", qf, key_matrix.astype(jnp.float32))
    attn = (attn + rel) / temperature
    attn = jax.nn.softmax(attn, axis=2)
    out = jnp.einsum("bij,bjh->bih", attn, vf)
    return out, attn


if __name__ == "__main__":
    # Small few-shot episode: N=2 classes, K=2 shots, +1 query token -> L=5
    N, K = 2, 2
    L = N * K + 1
    H = 32           # hidden_size
    B = 2            # batch
    temperature = math.sqrt(H)

    root = jax.random.PRNGKey(0)
    k_param, k_q, k_k, k_v = jax.random.split(root, 4)

    key_relative_embedding, attn_weight = init_params(k_param, H)
    rel_idx = build_relative_index_matrix(N, K, query=True)
    key_matrix = key_relative_embedding[rel_idx]     # (L, L, H), reference only

    q = jax.random.normal(k_q, (B, L, H), dtype=jnp.float32)
    k = jax.random.normal(k_k, (B, L, H), dtype=jnp.float32)
    v = jax.random.normal(k_v, (B, L, H), dtype=jnp.float32)

    # ---- f32 path ----
    out, attn = relative_attention(q, k, v, key_relative_embedding, rel_idx, temperature)
    out = jax.block_until_ready(out)
    attn = jax.block_until_ready(attn)

    out_ref, attn_ref = reference_forward(q, k, v, key_matrix, temperature)
    # approx=True softmax reciprocal introduces ~1e-3-level relative error.
    assert jnp.allclose(out, out_ref, atol=5e-3, rtol=5e-3), "f32 output mismatch"
    assert jnp.allclose(attn, attn_ref, atol=5e-3, rtol=5e-3), "f32 attn mismatch"

    # ---- bf16 MXU-input path (f32 accumulation) ----
    q16, k16, v16 = (x.astype(jnp.bfloat16) for x in (q, k, v))
    out16, attn16 = relative_attention(q16, k16, v16, key_relative_embedding,
                                       rel_idx, temperature)
    out16 = jax.block_until_ready(out16)
    attn16 = jax.block_until_ready(attn16)

    out_ref16, attn_ref16 = reference_forward(q16, k16, v16, key_matrix, temperature)
    assert jnp.allclose(out16.astype(jnp.float32), out_ref16, atol=1e-1, rtol=1e-1), \
        "bf16 output mismatch"
    assert jnp.allclose(attn16, attn_ref16, atol=5e-2, rtol=5e-2), "bf16 attn mismatch"

    print("KERNEL_OK")
</pallas_src>

<mosaic_0001>
module attributes {stable_mosaic.version = 11 : i64} {
  func.func @_rel_attn_kernel(%arg0: i32, %arg1: memref<2x5x32xf32, #tpu.memory_space<vmem>>, %arg2: memref<2x5x32xf32, #tpu.memory_space<vmem>>, %arg3: memref<2x5x32xf32, #tpu.memory_space<vmem>>, %arg4: memref<6x32xf32, #tpu.memory_space<vmem>>, %arg5: memref<5x5xi32, #tpu.memory_space<vmem>>, %arg6: memref<2x5x32xf32, #tpu.memory_space<vmem>>, %arg7: memref<2x5x5xf32, #tpu.memory_space<vmem>>) attributes {dimension_semantics = [#tpu.dimension_semantics<parallel>], iteration_bounds = array<i64: 1>, scalar_prefetch = 0 : i64, scratch_operands = 0 : i64, tpu.core_type = #tpu.core_type<tc>, window_params = [{transform_indices = @transform_0, window_bounds = array<i64: 2, 5, 32>}, {transform_indices = @transform_1, window_bounds = array<i64: 2, 5, 32>}, {transform_indices = @transform_2, window_bounds = array<i64: 2, 5, 32>}, {pipeline_mode = #tpu.pipeline_mode<synchronous>, transform_indices = @transform_3, window_bounds = array<i64: 6, 32>}, {pipeline_mode = #tpu.pipeline_mode<synchronous>, transform_indices = @transform_4, window_bounds = array<i64: 5, 5>}, {transform_indices = @transform_5, window_bounds = array<i64: 2, 5, 32>}, {transform_indices = @transform_6, window_bounds = array<i64: 2, 5, 5>}]} {
    %c0 = arith.constant 0 : index
    %c0_0 = arith.constant 0 : index
    %c0_1 = arith.constant 0 : index
    %0 = vector.load %arg1[%c0, %c0_0, %c0_1] : memref<2x5x32xf32, #tpu.memory_space<vmem>>, vector<2x5x32xf32>
    %c0_2 = arith.constant 0 : index
    %c0_3 = arith.constant 0 : index
    %c0_4 = arith.constant 0 : index
    %1 = vector.load %arg2[%c0_2, %c0_3, %c0_4] : memref<2x5x32xf32, #tpu.memory_space<vmem>>, vector<2x5x32xf32>
    %c0_5 = arith.constant 0 : index
    %c0_6 = arith.constant 0 : index
    %c0_7 = arith.constant 0 : index
    %2 = vector.load %arg3[%c0_5, %c0_6, %c0_7] : memref<2x5x32xf32, #tpu.memory_space<vmem>>, vector<2x5x32xf32>
    %c0_8 = arith.constant 0 : index
    %c0_9 = arith.constant 0 : index
    %3 = vector.load %arg4[%c0_8, %c0_9] : memref<6x32xf32, #tpu.memory_space<vmem>>, vector<6x32xf32>
    %c0_10 = arith.constant 0 : index
    %c0_11 = arith.constant 0 : index
    %4 = vector.load %arg5[%c0_10, %c0_11] : memref<5x5xi32, #tpu.memory_space<vmem>>, vector<5x5xi32>
    "tpu.trace_start"() <{level = 10 : i32, message = "bih,bjh->bij"}> : () -> ()
    %cst = arith.constant dense<0.000000e+00> : vector<2x5x5xf32>
    %5 = tpu.matmul %0, %1, %cst {dimension_numbers = #tpu.dot_dimension_numbers<[2], [2], [1], [1], [0, 0, 0, 1, 1, 1], [0], [0]>} : vector<2x5x32xf32>, vector<2x5x32xf32>, vector<2x5x5xf32> -> vector<2x5x5xf32>
    "tpu.trace_stop"() : () -> ()
    %6 = vector.shape_cast %3 : vector<6x32xf32> to vector<1x6x32xf32>
    %7 = vector.broadcast %6 : vector<1x6x32xf32> to vector<2x6x32xf32>
    "tpu.trace_start"() <{level = 10 : i32, message = "bih,bnh->bin"}> : () -> ()
    %cst_12 = arith.constant dense<0.000000e+00> : vector<2x5x6xf32>
    %8 = tpu.matmul %0, %7, %cst_12 {dimension_numbers = #tpu.dot_dimension_numbers<[2], [2], [1], [1], [0, 0, 0, 1, 1, 1], [0], [0]>} : vector<2x5x32xf32>, vector<2x6x32xf32>, vector<2x5x6xf32> -> vector<2x5x6xf32>
    %cst_13 = arith.constant 0.000000e+00 : f32
    "tpu.trace_stop"() : () -> ()
    %9 = vector.broadcast %cst_13 : f32 to vector<2x5x5xf32>
    %10 = vector.shape_cast %4 : vector<5x5xi32> to vector<1x5x5xi32>
    %c0_i32 = arith.constant 0 : i32
    %11 = vector.broadcast %c0_i32 : i32 to vector<1x5x5xi32>
    %12 = arith.cmpi eq, %10, %11 : vector<1x5x5xi32>
    %13 = vector.extract_strided_slice %8 {offsets = [0, 0, 0], sizes = [2, 5, 1], strides = [1, 1, 1]} : vector<2x5x6xf32> to vector<2x5x1xf32>
    %cst_14 = arith.constant 0.000000e+00 : f32
    %14 = vector.shape_cast %12 : vector<1x5x5xi1> to vector<1x5x5xi1>
    %15 = vector.broadcast %14 : vector<1x5x5xi1> to vector<2x5x5xi1>
    %16 = vector.shape_cast %13 : vector<2x5x1xf32> to vector<2x5x1xf32>
    %17 = vector.broadcast %16 : vector<2x5x1xf32> to vector<2x5x5xf32>
    %18 = vector.broadcast %cst_14 : f32 to vector<2x5x5xf32>
    %19 = arith.select %15, %17, %18 : vector<2x5x5xi1>, vector<2x5x5xf32>
    %20 = arith.addf %9, %19 : vector<2x5x5xf32>
    %21 = vector.shape_cast %4 : vector<5x5xi32> to vector<1x5x5xi32>
    %c1_i32 = arith.constant 1 : i32
    %22 = vector.broadcast %c1_i32 : i32 to vector<1x5x5xi32>
    %23 = arith.cmpi eq, %21, %22 : vector<1x5x5xi32>
    %24 = vector.extract_strided_slice %8 {offsets = [0, 0, 1], sizes = [2, 5, 1], strides = [1, 1, 1]} : vector<2x5x6xf32> to vector<2x5x1xf32>
    %cst_15 = arith.constant 0.000000e+00 : f32
    %25 = vector.shape_cast %23 : vector<1x5x5xi1> to vector<1x5x5xi1>
    %26 = vector.broadcast %25 : vector<1x5x5xi1> to vector<2x5x5xi1>
    %27 = vector.shape_cast %24 : vector<2x5x1xf32> to vector<2x5x1xf32>
    %28 = vector.broadcast %27 : vector<2x5x1xf32> to vector<2x5x5xf32>
    %29 = vector.broadcast %cst_15 : f32 to vector<2x5x5xf32>
    %30 = arith.select %26, %28, %29 : vector<2x5x5xi1>, vector<2x5x5xf32>
    %31 = arith.addf %20, %30 : vector<2x5x5xf32>
    %32 = vector.shape_cast %4 : vector<5x5xi32> to vector<1x5x5xi32>
    %c2_i32 = arith.constant 2 : i32
    %33 = vector.broadcast %c2_i32 : i32 to vector<1x5x5xi32>
    %34 = arith.cmpi eq, %32, %33 : vector<1x5x5xi32>
    %35 = vector.extract_strided_slice %8 {offsets = [0, 0, 2], sizes = [2, 5, 1], strides = [1, 1, 1]} : vector<2x5x6xf32> to vector<2x5x1xf32>
    %cst_16 = arith.constant 0.000000e+00 : f32
    %36 = vector.shape_cast %34 : vector<1x5x5xi1> to vector<1x5x5xi1>
    %37 = vector.broadcast %36 : vector<1x5x5xi1> to vector<2x5x5xi1>
    %38 = vector.shape_cast %35 : vector<2x5x1xf32> to vector<2x5x1xf32>
    %39 = vector.broadcast %38 : vector<2x5x1xf32> to vector<2x5x5xf32>
    %40 = vector.broadcast %cst_16 : f32 to vector<2x5x5xf32>
    %41 = arith.select %37, %39, %40 : vector<2x5x5xi1>, vector<2x5x5xf32>
    %42 = arith.addf %31, %41 : vector<2x5x5xf32>
    %43 = vector.shape_cast %4 : vector<5x5xi32> to vector<1x5x5xi32>
    %c3_i32 = arith.constant 3 : i32
    %44 = vector.broadcast %c3_i32 : i32 to vector<1x5x5xi32>
    %45 = arith.cmpi eq, %43, %44 : vector<1x5x5xi32>
    %46 = vector.extract_strided_slice %8 {offsets = [0, 0, 3], sizes = [2, 5, 1], strides = [1, 1, 1]} : vector<2x5x6xf32> to vector<2x5x1xf32>
    %cst_17 = arith.constant 0.000000e+00 : f32
    %47 = vector.shape_cast %45 : vector<1x5x5xi1> to vector<1x5x5xi1>
    %48 = vector.broadcast %47 : vector<1x5x5xi1> to vector<2x5x5xi1>
    %49 = vector.shape_cast %46 : vector<2x5x1xf32> to vector<2x5x1xf32>
    %50 = vector.broadcast %49 : vector<2x5x1xf32> to vector<2x5x5xf32>
    %51 = vector.broadcast %cst_17 : f32 to vector<2x5x5xf32>
    %52 = arith.select %48, %50, %51 : vector<2x5x5xi1>, vector<2x5x5xf32>
    %53 = arith.addf %42, %52 : vector<2x5x5xf32>
    %54 = vector.shape_cast %4 : vector<5x5xi32> to vector<1x5x5xi32>
    %c4_i32 = arith.constant 4 : i32
    %55 = vector.broadcast %c4_i32 : i32 to vector<1x5x5xi32>
    %56 = arith.cmpi eq, %54, %55 : vector<1x5x5xi32>
    %57 = vector.extract_strided_slice %8 {offsets = [0, 0, 4], sizes = [2, 5, 1], strides = [1, 1, 1]} : vector<2x5x6xf32> to vector<2x5x1xf32>
    %cst_18 = arith.constant 0.000000e+00 : f32
    %58 = vector.shape_cast %56 : vector<1x5x5xi1> to vector<1x5x5xi1>
    %59 = vector.broadcast %58 : vector<1x5x5xi1> to vector<2x5x5xi1>
    %60 = vector.shape_cast %57 : vector<2x5x1xf32> to vector<2x5x1xf32>
    %61 = vector.broadcast %60 : vector<2x5x1xf32> to vector<2x5x5xf32>
    %62 = vector.broadcast %cst_18 : f32 to vector<2x5x5xf32>
    %63 = arith.select %59, %61, %62 : vector<2x5x5xi1>, vector<2x5x5xf32>
    %64 = arith.addf %53, %63 : vector<2x5x5xf32>
    %65 = vector.shape_cast %4 : vector<5x5xi32> to vector<1x5x5xi32>
    %c5_i32 = arith.constant 5 : i32
    %66 = vector.broadcast %c5_i32 : i32 to vector<1x5x5xi32>
    %67 = arith.cmpi eq, %65, %66 : vector<1x5x5xi32>
    %68 = vector.extract_strided_slice %8 {offsets = [0, 0, 5], sizes = [2, 5, 1], strides = [1, 1, 1]} : vector<2x5x6xf32> to vector<2x5x1xf32>
    %cst_19 = arith.constant 0.000000e+00 : f32
    %69 = vector.shape_cast %67 : vector<1x5x5xi1> to vector<1x5x5xi1>
    %70 = vector.broadcast %69 : vector<1x5x5xi1> to vector<2x5x5xi1>
    %71 = vector.shape_cast %68 : vector<2x5x1xf32> to vector<2x5x1xf32>
    %72 = vector.broadcast %71 : vector<2x5x1xf32> to vector<2x5x5xf32>
    %73 = vector.broadcast %cst_19 : f32 to vector<2x5x5xf32>
    %74 = arith.select %70, %72, %73 : vector<2x5x5xi1>, vector<2x5x5xf32>
    %75 = arith.addf %64, %74 : vector<2x5x5xf32>
    %76 = arith.addf %5, %75 : vector<2x5x5xf32>
    %cst_20 = arith.constant 0.176776692 : f32
    %77 = vector.broadcast %cst_20 : f32 to vector<2x5x5xf32>
    %78 = arith.mulf %76, %77 : vector<2x5x5xf32>
    %cst_21 = arith.constant dense<0xFF800000> : vector<2x5xf32>
    %79 = vector.multi_reduction <maximumf>, %78, %cst_21 [2] : vector<2x5x5xf32> to vector<2x5xf32>
    %80 = vector.shape_cast %79 : vector<2x5xf32> to vector<2x5x1xf32>
    %81 = vector.broadcast %80 : vector<2x5x1xf32> to vector<2x5x5xf32>
    %82 = arith.subf %78, %81 : vector<2x5x5xf32>
    %83 = math.exp %82 : vector<2x5x5xf32>
    %cst_22 = arith.constant dense<0.000000e+00> : vector<2x5xf32>
    %84 = vector.multi_reduction <add>, %83, %cst_22 [2] : vector<2x5x5xf32> to vector<2x5xf32>
    %85 = vector.shape_cast %84 : vector<2x5xf32> to vector<2x5x1xf32>
    %86 = tpu.reciprocal %85 {approx = true} : vector<2x5x1xf32> -> vector<2x5x1xf32>
    %87 = vector.broadcast %86 : vector<2x5x1xf32> to vector<2x5x5xf32>
    %88 = arith.mulf %83, %87 : vector<2x5x5xf32>
    %c0_23 = arith.constant 0 : index
    %c0_24 = arith.constant 0 : index
    %c0_25 = arith.constant 0 : index
    %89 = vector.load %arg7[%c0_23, %c0_24, %c0_25] : memref<2x5x5xf32, #tpu.memory_space<vmem>>, vector<2x5x5xf32>
    tpu.vector_store %arg7[%c0_23, %c0_24, %c0_25], %88 {strides = array<i32>} : memref<2x5x5xf32, #tpu.memory_space<vmem>>, vector<2x5x5xf32>,
    "tpu.trace_start"() <{level = 10 : i32, message = "bij,bjh->bih"}> : () -> ()
    %cst_26 = arith.constant dense<0.000000e+00> : vector<2x5x32xf32>
    %90 = tpu.matmul %88, %2, %cst_26 {dimension_numbers = #tpu.dot_dimension_numbers<[2], [1], [1], [2], [0, 0, 0, 1, 1, 2], [0], [0]>} : vector<2x5x5xf32>, vector<2x5x32xf32>, vector<2x5x32xf32> -> vector<2x5x32xf32>
    "tpu.trace_stop"() : () -> ()
    %c0_27 = arith.constant 0 : index
    %c0_28 = arith.constant 0 : index
    %c0_29 = arith.constant 0 : index
    %91 = vector.load %arg6[%c0_27, %c0_28, %c0_29] : memref<2x5x32xf32, #tpu.memory_space<vmem>>, vector<2x5x32xf32>
    tpu.vector_store %arg6[%c0_27, %c0_28, %c0_29], %90 {strides = array<i32>} : memref<2x5x32xf32, #tpu.memory_space<vmem>>, vector<2x5x32xf32>,
    return
  }
  func.func @transform_0(%arg0: i32) -> (i32, i32, i32) {
    %c0_i32 = arith.constant 0 : i32
    %c0_i32_0 = arith.constant 0 : i32
    %c0_i32_1 = arith.constant 0 : i32
    return %arg0, %c0_i32, %c0_i32_0 : i32, i32, i32
  }
  func.func @transform_1(%arg0: i32) -> (i32, i32, i32) {
    %c0_i32 = arith.constant 0 : i32
    %c0_i32_0 = arith.constant 0 : i32
    %c0_i32_1 = arith.constant 0 : i32
    return %arg0, %c0_i32, %c0_i32_0 : i32, i32, i32
  }
  func.func @transform_2(%arg0: i32) -> (i32, i32, i32) {
    %c0_i32 = arith.constant 0 : i32
    %c0_i32_0 = arith.constant 0 : i32
    %c0_i32_1 = arith.constant 0 : i32
    return %arg0, %c0_i32, %c0_i32_0 : i32, i32, i32
  }
  func.func @transform_3(%arg0: i32) -> (i32, i32) {
    %c0_i32 = arith.constant 0 : i32
    %c0_i32_0 = arith.constant 0 : i32
    %c0_i32_1 = arith.constant 0 : i32
    return %c0_i32, %c0_i32_0 : i32, i32
  }
  func.func @transform_4(%arg0: i32) -> (i32, i32) {
    %c0_i32 = arith.constant 0 : i32
    %c0_i32_0 = arith.constant 0 : i32
    %c0_i32_1 = arith.constant 0 : i32
    return %c0_i32, %c0_i32_0 : i32, i32
  }
  func.func @transform_5(%arg0: i32) -> (i32, i32, i32) {
    %c0_i32 = arith.constant 0 : i32
    %c0_i32_0 = arith.constant 0 : i32
    %c0_i32_1 = arith.constant 0 : i32
    return %arg0, %c0_i32, %c0_i32_0 : i32, i32, i32
  }
  func.func @transform_6(%arg0: i32) -> (i32, i32, i32) {
    %c0_i32 = arith.constant 0 : i32
    %c0_i32_0 = arith.constant 0 : i32
    %c0_i32_1 = arith.constant 0 : i32
    return %arg0, %c0_i32, %c0_i32_0 : i32, i32, i32
  }
}

</mosaic_0001>

<bundles_post_ra>
// kernel: tpu_custom_call.1
= control target key start
LH: loop header
LB: loop body
LE: loop exit
PB: predicated region body
PF: predicated region fallthrough
CT: control target
= control target key end

     0   :  { %vm30_vm0 = vcmask 261120   ;;  %v689_v0 = vmov 0.0   ;;  %vm690_vm1 = vmmov 0   ;;  %v691_v6 = vmov 1   ;;  %s796_s3 = inlined_call_operand.vmem [shape: f32[6,32], index: 3, kind: input, shape index: {}]   ;;  %s797_s0 = inlined_call_operand.vmem [shape: f32[2,5,32], index: 0, kind: input, shape index: {}]   ;;  %s798_s1 = inlined_call_operand.vmem [shape: f32[2,5,32], index: 1, kind: input, shape index: {}]   ;;  %s799_s4 = inlined_call_operand.vmem [shape: s32[5,5], index: 4, kind: input, shape index: {}]   ;;  %s800_s2 = inlined_call_operand.vmem [shape: f32[2,5,32], index: 2, kind: input, shape index: {}]   ;;  %s801_s6 = inlined_call_operand.vmem [shape: f32[2,5,5], index: 6, kind: output, shape index: {1}]   ;;  %s802_s5 = inlined_call_operand.vmem [shape: f32[2,5,32], index: 5, kind: output, shape index: {0}]  }
   0x1   :  { %634 = vmatprep.subr.mxu0 %v689_v0  ;;  %v28_v1 = vld [vmem:[%s796_s3] sm:$0x3f]  ;;  %636 = vmatprep.mubr.msk.f32.mxu0 %vm690_vm1, %v689_v0  ;;  %v23_v3 = vld [vmem:[%s797_s0 + $0x8] sm:$0x1f]  ;;  %v692_v7 = vmov 0   ;;  %v693_v12 = vmov 2  }
   0x2   :  { %635 = vmatpush3.xpose.msk.msra.mxu0 %vm30_vm0, %v28_v1  ;;  %639 = vmatprep.subr.mxu1 %v689_v0  ;;  %v22_v2 = vld [vmem:[%s797_s0] sm:$0x1f]  ;;  %v25_v5 = vld [vmem:[%s798_s1 + $0x8] sm:$0x1f]  ;;  %v694_v13 = vmov 3   ;;  %v695_v14 = vmov 4  }
   0x3   :  { %640 = vmatpush3.xpose.msk.msra.mxu1 %vm30_vm0, %v28_v1  ;;  %641 = vmatprep.mubr.msk.f32.mxu1 %vm690_vm1, %v689_v0  ;;  %v24_v4 = vld [vmem:[%s798_s1] sm:$0x1f]  ;;  %v696_v15 = vmov 5   ;;  %vm420_vm8 = vcmask 36864   ;;  %vm449_vm9 = vcmask 1044480   ;;  %vm445_vm10 = vcmask 39936  }
   0x4   :  { %644 = vmatprep.subr.mxu0 %v689_v0  ;;  %649 = vmatprep.subr.mxu1 %v689_v0  ;;  %v29_v24 = vld [vmem:[%s799_s4] sm:$0x1f]  ;;  %vm599_vm11 = vcmask 258048  }
   0x5   :  { %637 = vmatmul.mubr.msk.f32.vlgmr.msra.gmra.mrb[0].mxu0 %vm30_vm0, %v22_v2  ;;  %673 = vset.pattern.permute.xlu1 %v691_v6  ;;  %vm197_vm2 = vcmp.eq.s32.totalorder %v29_v24, 1  ;;  %vm180_vm3 = vcmp.eq.s32.totalorder %v29_v24, 0  ;;  %vm212_vm4 = vcmp.eq.s32.totalorder %v29_v24, 2  ;;  %vm227_vm5 = vcmp.eq.s32.totalorder %v29_v24, 3 }
   0x6   :  { %642 = vmatmul.mubr.msk.f32.vlgmr.msra.gmra.mrb[0].mxu1 %vm30_vm0, %v23_v3  ;;  %645 = vmatpush3.xpose.msk.msra.mxu0 %vm30_vm0, %v24_v4  ;;  %vm242_vm6 = vcmp.eq.s32.totalorder %v29_v24, 4  ;;  %vm257_vm7 = vcmp.eq.s32.totalorder %v29_v24, 5 }
   0x7   :  { %646 = vmatprep.mubr.msk.f32.mxu0 %vm690_vm1, %v689_v0  ;;  %650 = vmatpush3.xpose.msk.msra.mxu1 %vm30_vm0, %v25_v5 }
   0x8   :  { %651 = vmatprep.mubr.msk.f32.mxu1 %vm690_vm1, %v689_v0  ;;  %672 = vset.pattern.permute.xlu0 %v692_v7  ;;  %v26_v7 = vld [vmem:[%s800_s2] sm:$0x1f] }
   0x9   :  { %647 = vmatmul.mubr.msk.f32.vlgmr.msra.gmra.mrb[2].mxu0 %vm30_vm0, %v22_v2  ;;  %654 = vmatprep.subr.mxu0 %v689_v0 }
   0xa   :  { %652 = vmatmul.mubr.msk.f32.vlgmr.msra.gmra.mrb[2].mxu1 %vm30_vm0, %v23_v3  ;;  %656 = vmatprep.mubr.msk.f32.mxu0 %vm690_vm1, %v689_v0 }
   0xb   :  { %659 = vmatprep.subr.mxu1 %v689_v0  ;;  %661 = vmatprep.mubr.msk.f32.mxu1 %vm690_vm1, %v689_v0 }
   0xc   :  { %655 = vmatpush3.msk.msra.mxu0 %vm449_vm9, %v26_v7 }
  0xd8   :  { %v103_v8 = vpop.f32.mrb[0].mxu0 }
  0xd9   :  { %201 = vperm.xlu1 %673, %v103_v8   ;;  %185 = vperm.xlu0 %672, %v103_v8   ;;  %v638_v9 = vpop.f32.mrb[1].mxu0  ;;  %v176_v10 = vpop.f32.mrb[0].mxu1 }
  0xda   :  { %v643_v11 = vpop.f32.mrb[1].mxu1 }
  0xdc   :  { %v341_v16 = vpop.f32.mrb[2].mxu0 }
  0xdd   :  { %205 = vperm.xlu1 %673, %v176_v10   ;;  %190 = vperm.xlu0 %672, %v176_v10   ;;  %v648_v17 = vpop.f32.mrb[3].mxu0  ;;  %v414_v18 = vpop.f32.mrb[2].mxu1 }
  0xde   :  { %v653_v19 = vpop.f32.mrb[3].mxu1 }
  0xe1   :  { %675 = vset.pattern.permute.xlu1 %v693_v12  ;;  %674 = vset.pattern.permute.xlu0 %v693_v12 }
  0xe2   :  { %220 = vperm.xlu1 %675, %v176_v10   ;;  %216 = vperm.xlu0 %674, %v103_v8  }
  0xe6   :  { %676 = vset.pattern.permute.xlu1 %v694_v13  ;;  %677 = vset.pattern.permute.xlu0 %v694_v13 }
  0xe7   :  { %231 = vperm.xlu1 %676, %v103_v8   ;;  %235 = vperm.xlu0 %677, %v176_v10  }
  0xeb   :  { %678 = vset.pattern.permute.xlu1 %v695_v14  ;;  %679 = vset.pattern.permute.xlu0 %v696_v15 }
  0xec   :  { %246 = vperm.xlu1 %678, %v103_v8   ;;  %261 = vperm.xlu0 %679, %v103_v8   ;;  %v27_v8 = vld [vmem:[%s800_s2 + $0x8] sm:$0x1f] }
  0xed   :  { %660 = vmatpush3.msk.msra.mxu1 %vm449_vm9, %v27_v8 }
  0xf0   :  { %250 = vperm.xlu1 %678, %v176_v10  }
  0xf4   :  { %680 = vset.pattern.permute.xlu1 %v696_v15 }
  0xf5   :  { %265 = vperm.xlu1 %680, %v176_v10  }
 0x158   :  { %v202_v20 = vpop.permute.xlu1 %201  ;;  %v186_v21 = vpop.permute.xlu0 %185 }
 0x159   :  { %v208_v27 = vsel %vm197_vm2, %v202_v20, 0.0  ;;  %v193_v28 = vsel %vm180_vm3, %v186_v21, 0.0 }
 0x15a   :  { %v210_v32 = vadd.f32 %v208_v27, %v193_v28 }
 0x15c   :  { %v206_v22 = vpop.permute.xlu1 %205  ;;  %v191_v23 = vpop.permute.xlu0 %190 }
 0x15d   :  { %v209_v35 = vsel %vm197_vm2, %v206_v22, 0.0  ;;  %v194_v36 = vsel %vm180_vm3, %v191_v23, 0.0 }
 0x15e   :  { %v211_v43 = vadd.f32 %v209_v35, %v194_v36 }
 0x161   :  { %v221_v25 = vpop.permute.xlu1 %220  ;;  %v217_v26 = vpop.permute.xlu0 %216 }
 0x162   :  { %v223_v29 = vsel %vm212_vm4, %v217_v26, 0.0  ;;  %v224_v41 = vsel %vm212_vm4, %v221_v25, 0.0 }
 0x163   :  { %v225_v34 = vadd.f32 %v223_v29, %v210_v32  ;;  %v226_v48 = vadd.f32 %v224_v41, %v211_v43 }
 0x166   :  { %v232_v30 = vpop.permute.xlu1 %231  ;;  %v236_v31 = vpop.permute.xlu0 %235 }
 0x167   :  { %v238_v33 = vsel %vm227_vm5, %v232_v30, 0.0  ;;  %v239_v45 = vsel %vm227_vm5, %v236_v31, 0.0 }
 0x168   :  { %v240_v37 = vadd.f32 %v238_v33, %v225_v34  ;;  %v241_v51 = vadd.f32 %v239_v45, %v226_v48 }
 0x16b   :  { %v247_v38 = vpop.permute.xlu1 %246  ;;  %v262_v39 = vpop.permute.xlu0 %261 }
 0x16c   :  { %v253_v40 = vsel %vm242_vm6, %v247_v38, 0.0  ;;  %v268_v44 = vsel %vm257_vm7, %v262_v39, 0.0 }
 0x16d   :  { %v255_v42 = vadd.f32 %v253_v40, %v240_v37 }
 0x16f   :  { %v270_v46 = vadd.f32 %v268_v44, %v255_v42  ;;  %v251_v47 = vpop.permute.xlu1 %250 }
 0x170   :  { %v254_v49 = vsel %vm242_vm6, %v251_v47, 0.0 }
 0x171   :  { %v342_v50 = vadd.f32 %v341_v16, %v270_v46  ;;  %v256_v53 = vadd.f32 %v254_v49, %v241_v51 }
 0x173   :  { %v418_v52 = vmul.f32 0.17677669, %v342_v50 }
 0x174   :  { %v266_v54 = vpop.permute.xlu1 %265 }
 0x175   :  { %v269_v55 = vsel %vm257_vm7, %v266_v54, 0.0  ;;  %v421_v56 = vsel %vm420_vm8, %v418_v52, -inf }
 0x176   :  { %v271_v57 = vadd.f32 %v269_v55, %v256_v53  ;;  %422 = vmax.xlane.f32.xlu1 %v421_v56 }
 0x178   :  { %v415_v58 = vadd.f32 %v414_v18, %v271_v57 }
 0x17a   :  { %v419_v59 = vmul.f32 0.17677669, %v415_v58 }
 0x17c   :  { %v424_v60 = vsel %vm420_vm8, %v419_v59, -inf }
 0x17d   :  { %425 = vmax.xlane.f32.xlu0 %v424_v60 }
 0x203   :  { %v423_v61 = vpop.xlane.xlu1 %422 }
 0x204   :  { %v427_v62 = vsub.f32 %v418_v52, %v423_v61 }
 0x206   :  { %v429_v63 = vmul.f32 1.442695, %v427_v62 }
 0x208   :  { %681 = vpow2.f32 %v429_v63 }
 0x20a   :  { %v426_v0 = vpop.xlane.xlu0 %425 }
 0x20b   :  { %v428_v1 = vsub.f32 %v419_v59, %v426_v0 }
 0x20d   :  { %v431_v2 = vmul.f32 1.442695, %v428_v1 }
 0x20f   :  { %683 = vpow2.f32 %v431_v2 }
 0x212   :  { %v682_v3 = vpop.eup %681 }
 0x213   :  { %v433_v4 = vsel %vm420_vm8, %v682_v3, 0.0 }
 0x214   :  { %434 = vadd.xlane.f32.xlu0 %v433_v4 }
 0x219   :  { %v684_v5 = vpop.eup %683 }
 0x21a   :  { %v436_v6 = vsel %vm420_vm8, %v684_v5, 0.0 }
 0x21b   :  { %437 = vadd.xlane.f32.xlu1 %v436_v6 }
 0x2a1   :  { %v435_v9 = vpop.xlane.xlu0 %434 }
 0x2a2   :  { %685 = vrcp.f32 %v435_v9 }
 0x2a8   :  { %v438_v10 = vpop.xlane.xlu1 %437 }
 0x2a9   :  { %687 = vrcp.f32 %v438_v10 }
 0x2ac   :  { %v686_v11 = vpop.eup %685 }
 0x2ad   :  { %v441_v12 = vmul.f32 %v686_v11, %v682_v3 }
 0x2af   :  { %443 = vst.msk [vmem:[%s801_s6] sm:$0x1f] %vm420_vm8, %v441_v12  ;;  %657 = vmatmul.mubr.msk.f32.vlgmr.msra.gmra.mrb[4].mxu0 %vm445_vm10, %v441_v12 }
 0x2b3   :  { %v688_v13 = vpop.eup %687 }
 0x2b4   :  { %v442_v14 = vmul.f32 %v688_v13, %v684_v5 }
 0x2b6   :  { %444 = vst.msk [vmem:[%s801_s6 + $0x8] sm:$0x1f] %vm420_vm8, %v442_v14  ;;  %662 = vmatmul.mubr.msk.f32.vlgmr.msra.gmra.mrb[4].mxu1 %vm445_vm10, %v442_v14 }
 0x382   :  { %v519_v15 = vpop.f32.mrb[4].mxu0 }
 0x383   :  { %600 = vst.msk [vmem:[%s802_s5] sm:$0x1f] %vm599_vm11, %v519_v15  ;;  %v658_v16 = vpop.f32.mrb[5].mxu0 }
 0x389   :  { %v595_v17 = vpop.f32.mrb[4].mxu1 }
 0x38a   :  { %601 = vst.msk [vmem:[%s802_s5 + $0x8] sm:$0x1f] %vm599_vm11, %v595_v17  ;;  %v663_v18 = vpop.f32.mrb[5].mxu1 }

</bundles_post_ra>
